<compile_context>
chip_gen: v7x
topology: tpu7x:2x2x1
jax: 0.10.0
libtpu: 0.0.40
codegen_flags: <defaults>
</compile_context>

<pallas_src>
import functools
import math

import jax
import jax.numpy as jnp
from jax.experimental import pallas as pl
from jax.experimental.pallas import tpu as pltpu

INPUT_SIZE = 28
HIDDEN_SIZE = 64
OUT_SIZE = 10
I_PAD = 32     # input-size padded to a sublane multiple; column 28 carries the bias "1"
O_PAD = 128    # head output padded to one full lane tile (unmasked vst)


def rnn_kernel(x_ref, wih_ref, whh_ref, wout_ref, bout_ref, out_ref,
               *, seq_len, batch):
    """Single invocation, everything resident in VMEM (< 100 KiB total).

    x_ref:    (seq_len * batch, I_PAD)  time-major, flattened, col 28 == 1.0 (bias hook)
    wih_ref:  (I_PAD, hidden)           W_ih^T with row 28 == b_ih + b_hh
    whh_ref:  (hidden, hidden)          W_hh^T
    wout_ref: (hidden, O_PAD)           W_out^T zero-padded to 128 lanes
    bout_ref: (1, O_PAD)                b_out zero-padded
    out_ref:  (batch, O_PAD)
    """
    # Hoisted input projection for ALL timesteps in one MXU call; bias is already
    # folded in via the ones column, so no broadcast add is needed.
    xp = jnp.dot(x_ref[...], wih_ref[...],
                 preferred_element_type=jnp.float32)          # (S*B, H)

    whh = whh_ref[...]

    # Step 0: h_0 == 0, so h_1 = tanh(xp_0) -- one fewer matmul on the serial chain.
    h = jnp.tanh(xp[0:batch, :])

    # Short static recurrence, fully unrolled: one (B,H)x(H,H) matmul + add + tanh / step.
    for t in range(1, seq_len):
        h = jnp.tanh(xp[t * batch:(t + 1) * batch, :]
                     + jnp.dot(h, whh, preferred_element_type=jnp.float32))

    # Lane-dense head write (O_PAD = 128 -> unmasked store).
    out_ref[...] = (jnp.dot(h, wout_ref[...], preferred_element_type=jnp.float32)
                    + bout_ref[...]).astype(out_ref.dtype)


def prepare_params(w_ih, w_hh, b_ih, b_hh, w_out, b_out):
    """One-time parameter preparation (run once, reuse across forward calls)."""
    I, H = w_ih.shape
    O = w_out.shape[1]
    # W_ih^T padded to K = I_PAD, with the folded bias living in row I (col I of x is 1.0).
    w_ih_p = jnp.zeros((I_PAD, H), jnp.float32)
    w_ih_p = w_ih_p.at[:I, :].set(w_ih)
    w_ih_p = w_ih_p.at[I, :].set((b_ih + b_hh).reshape(H))
    # Head weights padded to a full 128-lane output slab.
    w_out_p = jnp.zeros((H, O_PAD), jnp.float32).at[:, :O].set(w_out)
    b_out_p = jnp.zeros((1, O_PAD), jnp.float32).at[:, :O].set(b_out)
    return w_ih_p, w_hh, w_out_p, b_out_p


@jax.jit
def rnn_forward(x_bsi, w_ih_p, w_hh, w_out_p, b_out_p):
    """x_bsi: (batch, seq_len, input_size) float32, like the PyTorch module."""
    B, S, I = x_bsi.shape

    # Per-call input prep (the only per-call JAX work): time-major flatten + augment
    # with the bias "ones" column and zero K-padding. Fused by jit into one op.
    x_tm = jnp.transpose(x_bsi, (1, 0, 2)).reshape(S * B, I)
    x_aug = jnp.concatenate(
        [x_tm,
         jnp.ones((S * B, 1), x_tm.dtype),
         jnp.zeros((S * B, I_PAD - I - 1), x_tm.dtype)],
        axis=1)                                               # (S*B, I_PAD)

    kernel = functools.partial(rnn_kernel, seq_len=S, batch=B)
    vmem = pl.BlockSpec(memory_space=pltpu.MemorySpace.VMEM)

    out_p = pl.pallas_call(
        kernel,
        out_shape=jax.ShapeDtypeStruct((B, O_PAD), jnp.float32),
        in_specs=[vmem, vmem, vmem, vmem, vmem],   # whole arrays in VMEM, no pipeline
        out_specs=vmem,
    )(x_aug, w_ih_p, w_hh, w_out_p, b_out_p)

    return out_p[:, :OUT_SIZE]


def reference_forward(x_bsi, w_ih, w_hh, b_ih, b_hh, w_out, b_out):
    """Pure-JAX reference matching torch.nn.RNN(tanh, batch_first) + Linear."""
    B, S, I = x_bsi.shape
    H = w_ih.shape[1]
    h = jnp.zeros((B, H), jnp.float32)

    def step(h, x_t):
        h_new = jnp.tanh(x_t @ w_ih + b_ih + h @ w_hh + b_hh)
        return h_new, None

    h_last, _ = jax.lax.scan(step, h, jnp.transpose(x_bsi, (1, 0, 2)))
    return h_last @ w_out + b_out


def init_params(key):
    """Deterministic init mimicking PyTorch's uniform(-1/sqrt(H), 1/sqrt(H))."""
    k = 1.0 / math.sqrt(HIDDEN_SIZE)
    keys = jax.random.split(key, 6)
    # Stored already transposed (x @ W) relative to PyTorch's (H, I) convention.
    w_ih = jax.random.uniform(keys[0], (INPUT_SIZE, HIDDEN_SIZE), jnp.float32, -k, k)
    w_hh = jax.random.uniform(keys[1], (HIDDEN_SIZE, HIDDEN_SIZE), jnp.float32, -k, k)
    b_ih = jax.random.uniform(keys[2], (1, HIDDEN_SIZE), jnp.float32, -k, k)
    b_hh = jax.random.uniform(keys[3], (1, HIDDEN_SIZE), jnp.float32, -k, k)
    w_out = jax.random.uniform(keys[4], (HIDDEN_SIZE, OUT_SIZE), jnp.float32, -k, k)
    b_out = jax.random.uniform(keys[5], (1, OUT_SIZE), jnp.float32, -k, k)
    return w_ih, w_hh, b_ih, b_hh, w_out, b_out


if __name__ == "__main__":
    key = jax.random.PRNGKey(0)
    k_x, k_p = jax.random.split(key)

    B, S = 8, 8
    x = jax.random.normal(k_x, (B, S, INPUT_SIZE), jnp.float32)
    raw_params = init_params(k_p)

    # One-time prep (bias fold, K/lane padding) -- amortized across all forward calls.
    prepped = prepare_params(*raw_params)

    out = jax.block_until_ready(rnn_forward(x, *prepped))
    ref = jax.block_until_ready(reference_forward(x, *raw_params))

    assert out.shape == (B, OUT_SIZE), out.shape
    assert jnp.allclose(out, ref, atol=1e-5, rtol=1e-5), (
        f"max abs err {jnp.max(jnp.abs(out - ref))}")
    print("KERNEL_OK")
</pallas_src>

<mosaic_0001>
module attributes {stable_mosaic.version = 11 : i64} {
  func.func @rnn_kernel(%arg0: memref<64x32xf32, #tpu.memory_space<vmem>>, %arg1: memref<32x64xf32, #tpu.memory_space<vmem>>, %arg2: memref<64x64xf32, #tpu.memory_space<vmem>>, %arg3: memref<64x128xf32, #tpu.memory_space<vmem>>, %arg4: memref<1x128xf32, #tpu.memory_space<vmem>>, %arg5: memref<8x128xf32, #tpu.memory_space<vmem>>) attributes {dimension_semantics = [], scalar_prefetch = 0 : i64, scratch_operands = 0 : i64, tpu.core_type = #tpu.core_type<tc>} {
    %c0 = arith.constant 0 : index
    %c0_0 = arith.constant 0 : index
    %0 = vector.load %arg0[%c0, %c0_0] : memref<64x32xf32, #tpu.memory_space<vmem>>, vector<64x32xf32>
    %c0_1 = arith.constant 0 : index
    %c0_2 = arith.constant 0 : index
    %1 = vector.load %arg1[%c0_1, %c0_2] : memref<32x64xf32, #tpu.memory_space<vmem>>, vector<32x64xf32>
    %cst = arith.constant dense<0.000000e+00> : vector<64x64xf32>
    %2 = tpu.matmul %0, %1, %cst {dimension_numbers = #tpu.dot_dimension_numbers<[1], [0], [0], [1], [0, 0, 1, 1], [], []>} : vector<64x32xf32>, vector<32x64xf32>, vector<64x64xf32> -> vector<64x64xf32>
    %c0_3 = arith.constant 0 : index
    %c0_4 = arith.constant 0 : index
    %3 = vector.load %arg2[%c0_3, %c0_4] : memref<64x64xf32, #tpu.memory_space<vmem>>, vector<64x64xf32>
    %4 = vector.extract_strided_slice %2 {offsets = [0, 0], sizes = [8, 64], strides = [1, 1]} : vector<64x64xf32> to vector<8x64xf32>
    %5 = math.tanh %4 : vector<8x64xf32>
    %6 = vector.extract_strided_slice %2 {offsets = [8, 0], sizes = [8, 64], strides = [1, 1]} : vector<64x64xf32> to vector<8x64xf32>
    %cst_5 = arith.constant dense<0.000000e+00> : vector<8x64xf32>
    %7 = tpu.matmul %5, %3, %cst_5 {dimension_numbers = #tpu.dot_dimension_numbers<[1], [0], [0], [1], [0, 0, 1, 1], [], []>} : vector<8x64xf32>, vector<64x64xf32>, vector<8x64xf32> -> vector<8x64xf32>
    %8 = arith.addf %6, %7 : vector<8x64xf32>
    %9 = math.tanh %8 : vector<8x64xf32>
    %10 = vector.extract_strided_slice %2 {offsets = [16, 0], sizes = [8, 64], strides = [1, 1]} : vector<64x64xf32> to vector<8x64xf32>
    %cst_6 = arith.constant dense<0.000000e+00> : vector<8x64xf32>
    %11 = tpu.matmul %9, %3, %cst_6 {dimension_numbers = #tpu.dot_dimension_numbers<[1], [0], [0], [1], [0, 0, 1, 1], [], []>} : vector<8x64xf32>, vector<64x64xf32>, vector<8x64xf32> -> vector<8x64xf32>
    %12 = arith.addf %10, %11 : vector<8x64xf32>
    %13 = math.tanh %12 : vector<8x64xf32>
    %14 = vector.extract_strided_slice %2 {offsets = [24, 0], sizes = [8, 64], strides = [1, 1]} : vector<64x64xf32> to vector<8x64xf32>
    %cst_7 = arith.constant dense<0.000000e+00> : vector<8x64xf32>
    %15 = tpu.matmul %13, %3, %cst_7 {dimension_numbers = #tpu.dot_dimension_numbers<[1], [0], [0], [1], [0, 0, 1, 1], [], []>} : vector<8x64xf32>, vector<64x64xf32>, vector<8x64xf32> -> vector<8x64xf32>
    %16 = arith.addf %14, %15 : vector<8x64xf32>
    %17 = math.tanh %16 : vector<8x64xf32>
    %18 = vector.extract_strided_slice %2 {offsets = [32, 0], sizes = [8, 64], strides = [1, 1]} : vector<64x64xf32> to vector<8x64xf32>
    %cst_8 = arith.constant dense<0.000000e+00> : vector<8x64xf32>
    %19 = tpu.matmul %17, %3, %cst_8 {dimension_numbers = #tpu.dot_dimension_numbers<[1], [0], [0], [1], [0, 0, 1, 1], [], []>} : vector<8x64xf32>, vector<64x64xf32>, vector<8x64xf32> -> vector<8x64xf32>
    %20 = arith.addf %18, %19 : vector<8x64xf32>
    %21 = math.tanh %20 : vector<8x64xf32>
    %22 = vector.extract_strided_slice %2 {offsets = [40, 0], sizes = [8, 64], strides = [1, 1]} : vector<64x64xf32> to vector<8x64xf32>
    %cst_9 = arith.constant dense<0.000000e+00> : vector<8x64xf32>
    %23 = tpu.matmul %21, %3, %cst_9 {dimension_numbers = #tpu.dot_dimension_numbers<[1], [0], [0], [1], [0, 0, 1, 1], [], []>} : vector<8x64xf32>, vector<64x64xf32>, vector<8x64xf32> -> vector<8x64xf32>
    %24 = arith.addf %22, %23 : vector<8x64xf32>
    %25 = math.tanh %24 : vector<8x64xf32>
    %26 = vector.extract_strided_slice %2 {offsets = [48, 0], sizes = [8, 64], strides = [1, 1]} : vector<64x64xf32> to vector<8x64xf32>
    %cst_10 = arith.constant dense<0.000000e+00> : vector<8x64xf32>
    %27 = tpu.matmul %25, %3, %cst_10 {dimension_numbers = #tpu.dot_dimension_numbers<[1], [0], [0], [1], [0, 0, 1, 1], [], []>} : vector<8x64xf32>, vector<64x64xf32>, vector<8x64xf32> -> vector<8x64xf32>
    %28 = arith.addf %26, %27 : vector<8x64xf32>
    %29 = math.tanh %28 : vector<8x64xf32>
    %30 = vector.extract_strided_slice %2 {offsets = [56, 0], sizes = [8, 64], strides = [1, 1]} : vector<64x64xf32> to vector<8x64xf32>
    %cst_11 = arith.constant dense<0.000000e+00> : vector<8x64xf32>
    %31 = tpu.matmul %29, %3, %cst_11 {dimension_numbers = #tpu.dot_dimension_numbers<[1], [0], [0], [1], [0, 0, 1, 1], [], []>} : vector<8x64xf32>, vector<64x64xf32>, vector<8x64xf32> -> vector<8x64xf32>
    %32 = arith.addf %30, %31 : vector<8x64xf32>
    %33 = math.tanh %32 : vector<8x64xf32>
    %c0_12 = arith.constant 0 : index
    %c0_13 = arith.constant 0 : index
    %34 = vector.load %arg3[%c0_12, %c0_13] : memref<64x128xf32, #tpu.memory_space<vmem>>, vector<64x128xf32>
    %cst_14 = arith.constant dense<0.000000e+00> : vector<8x128xf32>
    %35 = tpu.matmul %33, %34, %cst_14 {dimension_numbers = #tpu.dot_dimension_numbers<[1], [0], [0], [1], [0, 0, 1, 1], [], []>} : vector<8x64xf32>, vector<64x128xf32>, vector<8x128xf32> -> vector<8x128xf32>
    %c0_15 = arith.constant 0 : index
    %c0_16 = arith.constant 0 : index
    %36 = vector.load %arg4[%c0_15, %c0_16] : memref<1x128xf32, #tpu.memory_space<vmem>>, vector<1x128xf32>
    %37 = vector.broadcast %36 : vector<1x128xf32> to vector<8x128xf32>
    %38 = arith.addf %35, %37 : vector<8x128xf32>
    %c0_17 = arith.constant 0 : index
    %c0_18 = arith.constant 0 : index
    %39 = vector.load %arg5[%c0_17, %c0_18] : memref<8x128xf32, #tpu.memory_space<vmem>>, vector<8x128xf32>
    tpu.vector_store %arg5[%c0_17, %c0_18], %38 {strides = array<i32>} : memref<8x128xf32, #tpu.memory_space<vmem>>, vector<8x128xf32>,
    return
  }
}

</mosaic_0001>

<bundles_post_ra>
// kernel: rnn_forward.1
= control target key start
LH: loop header
LB: loop body
LE: loop exit
PB: predicated region body
PF: predicated region fallthrough
CT: control target
= control target key end

     0   :  { %vm33_vm0 = vcmask 261120   ;;  %v1222_v6 = vmov 0.0|0.0   ;;  %s1458_s0 = inlined_call_operand.vmem [shape: f32[64,32], index: 0, kind: input, shape index: {}]   ;;  %s1459_s1 = inlined_call_operand.vmem [shape: f32[32,64], index: 1, kind: input, shape index: {}]   ;;  %s1460_s2 = inlined_call_operand.vmem [shape: f32[64,64], index: 2, kind: input, shape index: {}]   ;;  %s1461_s3 = inlined_call_operand.vmem [shape: f32[64,128], index: 3, kind: input, shape index: {}]   ;;  %s1462_s4 = inlined_call_operand.vmem [shape: f32[1,128], index: 4, kind: input, shape index: {}]   ;;  %s1463_s5 = inlined_call_operand.hbm [shape: f32[8,128], index: 5, kind: output, shape index: {}]  }
   0x1   :  { %v29_v0 = vld [vmem:[%s1459_s1] sm:$0xff]  ;;  %v30_v1 = vld [vmem:[%s1459_s1 + $0x8] sm:$0xff]  ;;  %v31_v2 = vld [vmem:[%s1459_s1 + $0x10] sm:$0xff]  ;;  %1082 = vmatprep.subr.bf16.mxu1 %v1222_v6 }
   0x2   :  { %v1074_v3 = vpack.c.bf16 %v30_v1, %v29_v0  ;;  %v32_v4 = vld [vmem:[%s1459_s1 + $0x18] sm:$0xff]  ;;  %v21_v5 = vld [vmem:[%s1458_s0] sm:$0xff]  ;;  %v164_v9 = vld [vmem:[%s1460_s2 + $0x8] sm:$0xff] }
   0x3   :  { %v1078_v7 = vpack.c.bf16 %v32_v4, %v31_v2  ;;  %910 = vmatprep.mubr.msk.f32.mxu0 %vm33_vm0, %v21_v5  ;;  %v163_v8 = vld [vmem:[%s1460_s2] sm:$0xff] }
   0x4   :  { %10 = vsyncpa [#allocation3], 0  ;;  %1075 = vmatprep.subr.bf16.mxu0 %v1074_v3  ;;  %v1279_v10 = vpack.c.bf16 %v164_v9, %v163_v8  ;;  %v22_v11 = vld [vmem:[%s1458_s0 + $0x8] sm:$0xff]  ;;  %v165_v12 = vld [vmem:[%s1460_s2 + $0x10] sm:$0xff]  ;;  %vm1223_vm1 = vmmov 0   ;;  %v1224_v20 = vmov 0.0  }
   0x5   :  { %1077 = vmatpush3.bf16.msra.mxu0 %v1074_v3  ;;  %v166_v13 = vld [vmem:[%s1460_s2 + $0x18] sm:$0xff]  ;;  %v167_v15 = vld [vmem:[%s1460_s2 + $0x20] sm:$0xff]  ;;  %v168_v16 = vld [vmem:[%s1460_s2 + $0x28] sm:$0xff]  ;;  %938 = vmatprep.mubr.msk.f32.mxu1 %vm1223_vm1, %v1224_v20  ;;  %vm172_vm2 = vcmask 523264   ;;  %s1225_s21 = smov [#allocation2]  }
   0x6   :  { %1079 = vmatprep.subr.bf16.mxu0 %v1078_v7  ;;  %1084 = vmatpush3.bf16.msra.mxu1 %v1279_v10  ;;  %v1296_v14 = vpack.c.bf16 %v166_v13, %v165_v12  ;;  %v1307_v17 = vpack.c.bf16 %v168_v16, %v167_v15  ;;  %v169_v18 = vld [vmem:[%s1460_s2 + $0x30] sm:$0xff]  ;;  %v170_v19 = vld [vmem:[%s1460_s2 + $0x38] sm:$0xff]  ;;  %v25_v27 = vld [vmem:[%s1458_s0 + $0x20] sm:$0xff]  ;;  %s793_s22 = sshll.u32 %s1225_s21, 4  ;;  %s794_s22 = int_to_ptr.vmem [resolvable:$true] %s793_s22 }
   0x7   :  { %1085 = vmatprep.subr.bf16.mxu1 %v1222_v6  ;;  %v1319_v21 = vpack.c.bf16 %v170_v19, %v169_v18  ;;  %v23_v22 = vld [vmem:[%s1458_s0 + $0x10] sm:$0xff]  ;;  %v24_v26 = vld [vmem:[%s1458_s0 + $0x18] sm:$0xff]  ;;  %v26_v28 = vld [vmem:[%s1458_s0 + $0x28] sm:$0xff]  ;;  %p1203_p1 = scmp.lt.s32.totalorder %s794_s22, %s794_s22 }
   0x8   :  { %v27_v29 = vld [vmem:[%s1458_s0 + $0x30] sm:$0xff]  ;;  %v28_v30 = vld [vmem:[%s1458_s0 + $0x38] sm:$0xff]  ;;  %v698_v57 = vld [vmem:[%s1461_s3] sm:$0xff] }
   0x9   :  { %1081 = vmatpush3.bf16.msra.mxu0 %v1078_v7  ;;  %v699_v58 = vld [vmem:[%s1461_s3 + $0x8] sm:$0xff]  ;;  %v700_v0 = vld [vmem:[%s1461_s3 + $0x10] sm:$0xff]  ;;  %v701_v1 = vld [vmem:[%s1461_s3 + $0x18] sm:$0xff] }
   0xa   :  { %1094 = vmatprep.subr.bf16.mxu0 %v1222_v6  ;;  %1087 = vmatpush3.bf16.msra.mxu1 %v1296_v14  ;;  %v1167_v59 = vpack.c.bf16 %v699_v58, %v698_v57  ;;  %v1170_v2 = vpack.c.bf16 %v701_v1, %v700_v0  ;;  %v702_v3 = vld [vmem:[%s1461_s3 + $0x20] sm:$0xff]  ;;  %v703_v4 = vld [vmem:[%s1461_s3 + $0x28] sm:$0xff]  ;;  %v704_v7 = vld [vmem:[%s1461_s3 + $0x30] sm:$0xff] }
   0xb   :  { %1088 = vmatprep.subr.bf16.mxu1 %v1222_v6  ;;  %v1173_v5 = vpack.c.bf16 %v703_v4, %v702_v3  ;;  %v705_v8 = vld [vmem:[%s1461_s3 + $0x38] sm:$0xff]  ;;  %s1198_s3 = scalar_lea.vmem %s794_s22, 128 }
   0xc   :  { %911 = vmatmul.mubr.msk.f32.vlgmr.msra.gmra.mrb[0].mxu0 %vm33_vm0, %v22_v11  ;;  %v1176_v9 = vpack.c.bf16 %v705_v8, %v704_v7  ;;  %p1199_p0 = scmp.ne.s32.totalorder %s794_s22, %s1198_s3  ;;  %p1204_p2 = scmp.lt.s32.totalorder %s1198_s3, %s1198_s3 }
   0xd   :  { %1096 = vmatpush3.bf16.msra.mxu0 %v1279_v10  ;;  %913 = vmatprep.mubr.msk.f32.mxu0 %vm33_vm0, %v23_v22 }
   0xe   :  { %1097 = vmatprep.subr.bf16.mxu0 %v1222_v6  ;;  %1090 = vmatpush3.bf16.msra.mxu1 %v1307_v17  ;;  %p1205_p3 = por %p1204_p2, %p1203_p1 }
   0xf   :  { %1091 = vmatprep.subr.bf16.mxu1 %v1222_v6 }
  0x10   :  { %914 = vmatmul.mubr.msk.f32.gmra.mrb[2].mxu0 %vm33_vm0, %v24_v26  ;;  %p1206_p4 = pnand %p1205_p3, %p1199_p0 }
  0x11   :  { %1099 = vmatpush3.bf16.msra.mxu0 %v1296_v14  ;;  %916 = vmatprep.mubr.msk.f32.mxu0 %vm33_vm0, %v25_v27 }
  0x12   :  { %1100 = vmatprep.subr.bf16.mxu0 %v1222_v6  ;;  %1093 = vmatpush3.bf16.msra.mxu1 %v1319_v21 }
  0x13   :  { %1106 = vmatprep.subr.bf16.mxu1 %v1222_v6 }
  0x14   :  { %917 = vmatmul.mubr.msk.f32.gmra.mrb[4].mxu0 %vm33_vm0, %v26_v28 }
  0x15   :  { %1102 = vmatpush3.bf16.msra.mxu0 %v1307_v17  ;;  %919 = vmatprep.mubr.msk.f32.mxu0 %vm33_vm0, %v27_v29 }
  0x16   :  { %1103 = vmatprep.subr.bf16.mxu0 %v1222_v6 }
  0x18   :  { %920 = vmatmul.mubr.msk.f32.gmra.mrb[6].mxu0 %vm33_vm0, %v28_v30 }
  0x19   :  { %1105 = vmatpush3.bf16.msra.mxu0 %v1319_v21  ;;  %957 = vmatprep.mubr.msk.f32.mxu0 %vm1223_vm1, %v1224_v20 }
  0x1a   :  { %1118 = vmatprep.subr.bf16.mxu0 %v1222_v6 }
  0xdf   :  { %v912_v23 = vpop.f32.mrb[0].mxu0 }
  0xe0   :  { %v124_v24 = vpop.f32.mrb[1].mxu0 }
  0xe1   :  { %1182 = vtanh.f32 %v124_v24 }
  0xe3   :  { %v915_v35 = vpop.f32.mrb[2].mxu0 }
  0xe4   :  { %v134_v36 = vpop.f32.mrb[3].mxu0 }
  0xe7   :  { %v918_v37 = vpop.f32.mrb[4].mxu0 }
  0xe8   :  { %v144_v38 = vpop.f32.mrb[5].mxu0 }
  0xeb   :  { %v1183_v25 = vpop.eup %1182  ;;  %v1376_v39 = vpop.f32.mrb[6].mxu0 }
  0xec   :  { %939 = vmatmul.mubr.msk.f32.vlgmr.msra.gmra.mrb[0].mxu1 %vm172_vm2, %v1183_v25  ;;  %v154_v40 = vpop.f32.mrb[7].mxu0 }
  0xed   :  { %1108 = vmatpush3.bf16.msra.mxu1 %v1279_v10  ;;  %976 = vmatprep.mubr.msk.f32.mxu1 %vm1223_vm1, %v1224_v20 }
  0xee   :  { %1109 = vmatprep.subr.bf16.mxu1 %v1222_v6 }
  0xf1   :  { %1111 = vmatpush3.bf16.msra.mxu1 %v1296_v14 }
  0xf2   :  { %1112 = vmatprep.subr.bf16.mxu1 %v1222_v6 }
  0xf5   :  { %1114 = vmatpush3.bf16.msra.mxu1 %v1307_v17 }
  0xf6   :  { %1115 = vmatprep.subr.bf16.mxu1 %v1222_v6 }
  0xf9   :  { %1117 = vmatpush3.bf16.msra.mxu1 %v1319_v21 }
  0xfa   :  { %1130 = vmatprep.subr.bf16.mxu1 %v1222_v6 }
 0x1bf   :  { %v242_v31 = vpop.f32.mrb[0].mxu1 }
 0x1c0   :  { %v246_v32 = vadd.f32 %v912_v23, %v242_v31  ;;  %v940_v33 = vpop.f32.mrb[1].mxu1 }
 0x1c2   :  { %1184 = vtanh.f32 %v246_v32 }
 0x1cc   :  { %v1185_v34 = vpop.eup %1184 }
 0x1cd   :  { %958 = vmatmul.mubr.msk.f32.vlgmr.msra.gmra.mrb[8].mxu0 %vm172_vm2, %v1185_v34 }
 0x1ce   :  { %1120 = vmatpush3.bf16.msra.mxu0 %v1279_v10  ;;  %995 = vmatprep.mubr.msk.f32.mxu0 %vm1223_vm1, %v1224_v20 }
 0x1cf   :  { %1121 = vmatprep.subr.bf16.mxu0 %v1222_v6 }
 0x1d2   :  { %1123 = vmatpush3.bf16.msra.mxu0 %v1296_v14 }
 0x1d3   :  { %1124 = vmatprep.subr.bf16.mxu0 %v1222_v6 }
 0x1d6   :  { %1126 = vmatpush3.bf16.msra.mxu0 %v1307_v17 }
 0x1d7   :  { %1127 = vmatprep.subr.bf16.mxu0 %v1222_v6 }
 0x1da   :  { %1129 = vmatpush3.bf16.msra.mxu0 %v1319_v21 }
 0x1db   :  { %1142 = vmatprep.subr.bf16.mxu0 %v1222_v6 }
 0x2a0   :  { %v317_v41 = vpop.f32.mrb[8].mxu0 }
 0x2a1   :  { %v321_v42 = vadd.f32 %v317_v41, %v134_v36  ;;  %v959_v43 = vpop.f32.mrb[9].mxu0 }
 0x2a3   :  { %1186 = vtanh.f32 %v321_v42 }
 0x2ad   :  { %v1187_v44 = vpop.eup %1186 }
 0x2ae   :  { %977 = vmatmul.mubr.msk.f32.vlgmr.msra.gmra.mrb[2].mxu1 %vm172_vm2, %v1187_v44 }
 0x2af   :  { %1132 = vmatpush3.bf16.msra.mxu1 %v1279_v10  ;;  %1014 = vmatprep.mubr.msk.f32.mxu1 %vm1223_vm1, %v1224_v20 }
 0x2b0   :  { %1133 = vmatprep.subr.bf16.mxu1 %v1222_v6 }
 0x2b3   :  { %1135 = vmatpush3.bf16.msra.mxu1 %v1296_v14 }
 0x2b4   :  { %1136 = vmatprep.subr.bf16.mxu1 %v1222_v6 }
 0x2b7   :  { %1138 = vmatpush3.bf16.msra.mxu1 %v1307_v17 }
 0x2b8   :  { %1139 = vmatprep.subr.bf16.mxu1 %v1222_v6 }
 0x2bb   :  { %1141 = vmatpush3.bf16.msra.mxu1 %v1319_v21 }
 0x2bc   :  { %1154 = vmatprep.subr.bf16.mxu1 %v1222_v6 }
 0x381   :  { %v392_v45 = vpop.f32.mrb[2].mxu1 }
 0x382   :  { %v396_v46 = vadd.f32 %v915_v35, %v392_v45  ;;  %v978_v47 = vpop.f32.mrb[3].mxu1 }
 0x384   :  { %1188 = vtanh.f32 %v396_v46 }
 0x38e   :  { %v1189_v48 = vpop.eup %1188 }
 0x38f   :  { %996 = vmatmul.mubr.msk.f32.vlgmr.msra.gmra.mrb[10].mxu0 %vm172_vm2, %v1189_v48 }
 0x390   :  { %1144 = vmatpush3.bf16.msra.mxu0 %v1279_v10  ;;  %1033 = vmatprep.mubr.msk.f32.mxu0 %vm1223_vm1, %v1224_v20 }
 0x391   :  { %1145 = vmatprep.subr.bf16.mxu0 %v1222_v6 }
 0x394   :  { %1147 = vmatpush3.bf16.msra.mxu0 %v1296_v14 }
 0x395   :  { %1148 = vmatprep.subr.bf16.mxu0 %v1222_v6 }
 0x398   :  { %1150 = vmatpush3.bf16.msra.mxu0 %v1307_v17 }
 0x399   :  { %1151 = vmatprep.subr.bf16.mxu0 %v1222_v6 }
 0x39c   :  { %1153 = vmatpush3.bf16.msra.mxu0 %v1319_v21 }
 0x39d   :  { %1166 = vmatprep.subr.bf16.mxu0 %v1222_v6 }
 0x462   :  { %v467_v49 = vpop.f32.mrb[10].mxu0 }
 0x463   :  { %v471_v50 = vadd.f32 %v467_v49, %v144_v38  ;;  %v997_v51 = vpop.f32.mrb[11].mxu0 }
 0x465   :  { %1190 = vtanh.f32 %v471_v50 }
 0x46f   :  { %v1191_v52 = vpop.eup %1190 }
 0x470   :  { %1015 = vmatmul.mubr.msk.f32.vlgmr.msra.gmra.mrb[4].mxu1 %vm172_vm2, %v1191_v52 }
 0x471   :  { %1156 = vmatpush3.bf16.msra.mxu1 %v1279_v10  ;;  %1052 = vmatprep.mubr.msk.f32.mxu1 %vm1223_vm1, %v1224_v20 }
 0x472   :  { %1157 = vmatprep.subr.bf16.mxu1 %v1222_v6 }
 0x475   :  { %1159 = vmatpush3.bf16.msra.mxu1 %v1296_v14  ;;  %v816_v14 = vld [vmem:[%s1462_s4] ss:$0 sm:$0xff] }
 0x476   :  { %1160 = vmatprep.subr.bf16.mxu1 %v1222_v6 }
 0x479   :  { %1162 = vmatpush3.bf16.msra.mxu1 %v1307_v17 }
 0x47a   :  { %1163 = vmatprep.subr.bf16.mxu1 %v1222_v6 }
 0x47d   :  { %1165 = vmatpush3.bf16.msra.mxu1 %v1319_v21 }
 0x543   :  { %v542_v53 = vpop.f32.mrb[4].mxu1 }
 0x544   :  { %v546_v54 = vadd.f32 %v918_v37, %v542_v53  ;;  %v1016_v55 = vpop.f32.mrb[5].mxu1 }
 0x546   :  { %1192 = vtanh.f32 %v546_v54 }
 0x550   :  { %v1193_v56 = vpop.eup %1192 }
 0x551   :  { %1034 = vmatmul.mubr.msk.f32.vlgmr.msra.gmra.mrb[12].mxu0 %vm172_vm2, %v1193_v56 }
 0x552   :  { %1071 = vmatprep.mubr.msk.f32.mxu0 %vm1223_vm1, %v1224_v20  ;;  %1168 = vmatpush3.bf16.msra.mxu0 %v1167_v59 }
 0x553   :  { %1169 = vmatprep.subr.bf16.mxu0 %v1222_v6 }
 0x556   :  { %1171 = vmatpush3.bf16.msra.mxu0 %v1170_v2 }
 0x557   :  { %1172 = vmatprep.subr.bf16.mxu0 %v1222_v6 }
 0x55a   :  { %1174 = vmatpush3.bf16.msra.mxu0 %v1173_v5 }
 0x55b   :  { %1175 = vmatprep.subr.bf16.mxu0 %v1222_v6 }
 0x55e   :  { %1177 = vmatpush3.bf16.msra.mxu0 %v1176_v9 }
 0x624   :  { %v617_v60 = vpop.f32.mrb[12].mxu0 }
 0x625   :  { %v621_v61 = vadd.f32 %v617_v60, %v154_v40  ;;  %v1035_v62 = vpop.f32.mrb[13].mxu0 }
 0x627   :  { %1194 = vtanh.f32 %v621_v61 }
 0x631   :  { %v1195_v63 = vpop.eup %1194 }
 0x632   :  { %1053 = vmatmul.mubr.msk.f32.vlgmr.msra.gmra.mrb[6].mxu1 %vm172_vm2, %v1195_v63 }
 0x705   :  { %v692_v10 = vpop.f32.mrb[6].mxu1 }
 0x706   :  { %v696_v11 = vadd.f32 %v1376_v39, %v692_v10  ;;  %v1054_v12 = vpop.f32.mrb[7].mxu1 }
 0x708   :  { %1196 = vtanh.f32 %v696_v11 }
 0x712   :  { %v1197_v13 = vpop.eup %1196 }
 0x713   :  { %1072 = vmatmul.mubr.msk.f32.vlgmr.msra.gmra.mrb[14].mxu0 %vm172_vm2, %v1197_v13 }
 0x7e6   :  { %v782_v15 = vpop.f32.mrb[14].mxu0 }
 0x7e7   :  { %v783_v16 = vadd.f32 %v816_v14, %v782_v15  ;;  %v1073_v17 = vpop.f32.mrb[15].mxu0 }
 0x7e9   :  { %786 = vst [vmem:[#allocation2] sm:$0xff] %v783_v16 }
 0x7ea   :  { %1209 = shalt.err (!%p1206_p4)
}
 0x7eb   :  { %s1210_s25 = scalar_lea.hbm %s1463_s5, 128 }
 0x7ec   :  { %p1211_p5 = scmp.ne.s32.totalorder %s1463_s5, %s1210_s25  ;;  %p1214_p6 = scmp.lt.u32.totalorder %s1210_s25, %s1463_s5 }
 0x7ee   :  { %p1216_p7 = pnand %p1214_p6, %p1211_p5 }
 0x7f0   :  { %1219 = shalt.err (!%p1216_p7)
}
 0x7f1   :  { %796 = dma.vmem_to_hbm [thread:$0]  %s794_s22, 128, %s1463_s5, [#allocation3]  }
 0x7f2   :  { %1220 = dma.done.wait [#allocation3], 128  }
 0x7f3   :  { %1221 = vsyncadd [#allocation3], 4294967168 }
 0x7f4   :  { %800 = vsyncpa [#allocation3], 1 }

</bundles_post_ra>
